<compile_context>
chip_gen: v5e
topology: v5e:2x2
jax: 0.10.0
libtpu: 0.0.40
codegen_flags: <defaults>
</compile_context>

<pallas_src>
import functools

import jax
import jax.numpy as jnp
from jax import lax
from jax.experimental import pallas as pl
from jax.experimental.pallas import tpu as pltpu


def _sdpa_kernel(q_ref, k_ref, v_ref, out_ref, attn_ref, log_attn_ref, *,
                 inv_temperature, lk_valid, lk_block, mm_dtype):
    # Blocks: q (BB, TQ, D), k (BB, Lk, D), v (BB, Lk, Dv)
    # Fold 1/temperature into q (Lq*D multiplies instead of Lq*Lk divides).
    q = q_ref[...] * jnp.asarray(inv_temperature, q_ref.dtype)
    k = k_ref[...]
    if mm_dtype is not None:           # optional bf16 MXU path (off by default)
        q = q.astype(mm_dtype)
        k = k.astype(mm_dtype)

    # scores = (q / temperature) @ k^T — contraction over D expressed directly
    # (no XLU transpose before the MXU), f32 accumulation.
    scores = lax.dot_general(
        q, k,
        dimension_numbers=(((2,), (2,)), ((0,), (0,))),
        preferred_element_type=jnp.float32,
    )  # (BB, TQ, Lk) f32

    if lk_valid < lk_block:
        # Keys beyond lk_valid are zero-padding added by the wrapper for lane-dense
        # (multiple-of-128) output stores: mask them out of the softmax.
        key_idx = lax.broadcasted_iota(jnp.int32, scores.shape, dimension=2)
        scores = jnp.where(key_idx < lk_valid, scores, -jnp.inf)

    # Numerically stable softmax / log_softmax along the key axis (dim=2).
    m = jnp.max(scores, axis=-1, keepdims=True)
    shifted = scores - m
    e = jnp.exp(shifted)
    s = jnp.sum(e, axis=-1, keepdims=True)

    # Store log_attn / attn as soon as they are ready — keeps the number of live
    # (TQ, Lk) f32 temporaries small across the PV matmul below.
    log_attn_ref[...] = (shifted - jnp.log(s)).astype(log_attn_ref.dtype)
    # Exact reciprocal. approx=True (EUP vrcp, essentially free) would trade ~1e-3
    # relative error in attn, which the 1e-5 tolerance here does not allow.
    attn = e * pl.reciprocal(s, approx=False)
    attn_ref[...] = attn.astype(attn_ref.dtype)

    # output = attn @ v, reading attn back from the already-written VMEM output
    # block so scores/shifted/e/attn need not stay live across the matmul.
    pv_lhs = attn_ref[...]
    pv_rhs = v_ref[...]
    if mm_dtype is not None:
        pv_lhs = pv_lhs.astype(mm_dtype)
        pv_rhs = pv_rhs.astype(mm_dtype)
    else:
        pv_lhs = pv_lhs.astype(pv_rhs.dtype)
    out = lax.dot_general(
        pv_lhs, pv_rhs,
        dimension_numbers=(((2,), (1,)), ((0,), (0,))),
        preferred_element_type=jnp.float32,
    )  # (BB, TQ, Dv) f32
    out_ref[...] = out.astype(out_ref.dtype)


def _round_up(x, m):
    return ((x + m - 1) // m) * m


def _per_step_vmem_bytes(bb, tq, lk, d, dv, io_itemsize):
    """Estimated VMEM bytes for one grid step (double-buffered blocks + f32 temps)."""
    nbuf = 2  # Pallas double-buffers every BlockSpec by default.
    blocks_in = nbuf * io_itemsize * bb * (tq * d + lk * d + lk * dv)
    blocks_out = nbuf * io_itemsize * bb * (tq * dv + 2 * tq * lk)
    # f32 intermediates: ~3-4 (TQ, Lk) tiles live at peak (scores/shifted/e + slack),
    # plus the f32 PV accumulator and the (TQ, 1) max/sum columns.
    temps = 4 * bb * (4 * tq * lk + tq * dv + 2 * tq)
    return blocks_in + blocks_out + temps


def scaled_dot_product_attention(q, k, v, temperature, use_bf16_matmul=False):
    B, Lq, D = q.shape
    Bk, Lk, Dk = k.shape
    Bv, Lkv, Dv = v.shape
    assert B == Bk == Bv and D == Dk and Lk == Lkv

    out_dtype = q.dtype
    io_itemsize = jnp.dtype(q.dtype).itemsize

    # ---- per-generation VMEM cap (v5e/v6e: 128 MiB, v7x: 64 MiB per TC) ----
    try:
        vmem_capacity = int(pltpu.get_tpu_info().vmem_capacity_bytes)
    except Exception:
        vmem_capacity = 64 * 1024 * 1024  # conservative fallback (v7x per-TC)
    vmem_limit_bytes = min(96 * 1024 * 1024, (vmem_capacity * 3) // 4)
    budget = int(vmem_limit_bytes * 0.8)  # headroom for compiler scratch

    # ---- lane-dense outputs: pad Lk to a multiple of 128 when the overhead is modest ----
    LANE = 128
    Lk_pad = Lk
    if Lk >= LANE and Lk % LANE != 0:
        Lk_pad = _round_up(Lk, LANE)
    if Lk_pad != Lk:
        k = jnp.pad(k, ((0, 0), (0, Lk_pad - Lk), (0, 0)))
        v = jnp.pad(v, ((0, 0), (0, Lk_pad - Lk), (0, 0)))

    # ---- TQ: largest q-row tile whose single-batch step fits the VMEM budget ----
    TQ_MAX = 1024
    tq_candidates = ([Lq] if Lq <= TQ_MAX else []) + \
        [c for c in (1024, 512, 256, 128, 64, 32, 16, 8) if c < Lq]
    tq_candidates = sorted(set(tq_candidates), reverse=True)
    TQ = tq_candidates[-1]
    for cand in tq_candidates:
        if _per_step_vmem_bytes(1, cand, Lk_pad, D, Dv, io_itemsize) <= budget:
            TQ = cand
            break

    # ---- BB: pack batch elements per step to amortize ~0.35 us grid-step overhead ----
    one_b = max(1, _per_step_vmem_bytes(1, TQ, Lk_pad, D, Dv, io_itemsize))
    BB = max(1, min(B, budget // one_b))

    grid_b = pl.cdiv(B, BB)
    grid_q = pl.cdiv(Lq, TQ)
    grid = (grid_b, grid_q)

    mm_dtype = jnp.bfloat16 if (use_bf16_matmul and q.dtype == jnp.float32) else None
    kernel = functools.partial(
        _sdpa_kernel,
        inv_temperature=1.0 / float(temperature),
        lk_valid=Lk, lk_block=Lk_pad, mm_dtype=mm_dtype,
    )

    out_shapes = (
        jax.ShapeDtypeStruct((B, Lq, Dv), out_dtype),      # output
        jax.ShapeDtypeStruct((B, Lq, Lk_pad), out_dtype),  # attn (post-softmax)
        jax.ShapeDtypeStruct((B, Lq, Lk_pad), out_dtype),  # log_attn
    )

    grid_spec = pltpu.PrefetchScalarGridSpec(
        num_scalar_prefetch=0,
        grid=grid,
        in_specs=[
            # q tiles stream along the q axis.
            pl.BlockSpec((BB, TQ, D), lambda bi, qi: (bi, qi, 0)),
            # K / V ignore the q-tile index -> stay resident across q tiles.
            pl.BlockSpec((BB, Lk_pad, D), lambda bi, qi: (bi, 0, 0)),
            pl.BlockSpec((BB, Lk_pad, Dv), lambda bi, qi: (bi, 0, 0)),
        ],
        out_specs=[
            pl.BlockSpec((BB, TQ, Dv), lambda bi, qi: (bi, qi, 0)),
            pl.BlockSpec((BB, TQ, Lk_pad), lambda bi, qi: (bi, qi, 0)),
            pl.BlockSpec((BB, TQ, Lk_pad), lambda bi, qi: (bi, qi, 0)),
        ],
    )

    # When the batch axis has >= 2 steps, keep a megacore (v7x) split on it so the
    # two TensorCores don't both DMA the same K/V blocks; no-op on 1-TC chips.
    dim_sem = ("parallel", "arbitrary") if grid_b >= 2 else ("parallel", "parallel")

    out, attn, log_attn = pl.pallas_call(
        kernel,
        out_shape=out_shapes,
        grid_spec=grid_spec,
        compiler_params=pltpu.CompilerParams(
            dimension_semantics=dim_sem,
            vmem_limit_bytes=vmem_limit_bytes,
        ),
    )(q, k, v)

    if Lk_pad != Lk:
        attn = attn[:, :, :Lk]
        log_attn = log_attn[:, :, :Lk]
    return out, attn, log_attn


def _reference(q, k, v, temperature):
    attn = jnp.einsum("bqd,bkd->bqk", q, k) / temperature
    log_attn = jax.nn.log_softmax(attn, axis=2)
    attn = jax.nn.softmax(attn, axis=2)
    out = jnp.einsum("bqk,bkd->bqd", attn, v)
    return out, attn, log_attn


if __name__ == "__main__":
    def run_case(key, B, Lq, Lk, D, Dv):
        temperature = float(D) ** 0.5   # typical FEAT choice: sqrt(d_k)
        kq, kk, kv = jax.random.split(key, 3)
        q = jax.random.normal(kq, (B, Lq, D), dtype=jnp.float32)
        k = jax.random.normal(kk, (B, Lk, D), dtype=jnp.float32)
        v = jax.random.normal(kv, (B, Lk, Dv), dtype=jnp.float32)
        out, attn, log_attn = scaled_dot_product_attention(q, k, v, temperature)
        jax.block_until_ready((out, attn, log_attn))
        ref_out, ref_attn, ref_log_attn = _reference(q, k, v, temperature)
        assert jnp.allclose(out, ref_out, atol=1e-5, rtol=1e-5)
        assert jnp.allclose(attn, ref_attn, atol=1e-5, rtol=1e-5)
        assert jnp.allclose(log_attn, ref_log_attn, atol=1e-5, rtol=1e-5)

    root = jax.random.PRNGKey(0)
    k1, k2 = jax.random.split(root)
    # Small shapes consistent with the module's bmm forward (eval-mode dropout = identity).
    run_case(k1, B=2, Lq=8, Lk=8, D=32, Dv=32)
    # Exercise the lane-dense path: Lk=136 is zero-padded to 256 and masked in-kernel.
    run_case(k2, B=2, Lq=8, Lk=136, D=32, Dv=32)
    print("KERNEL_OK")
</pallas_src>

<mosaic_0001>
module attributes {stable_mosaic.version = 11 : i64} {
  func.func @_sdpa_kernel(%arg0: i32, %arg1: i32, %arg2: memref<2x8x32xf32, #tpu.memory_space<vmem>>, %arg3: memref<2x8x32xf32, #tpu.memory_space<vmem>>, %arg4: memref<2x8x32xf32, #tpu.memory_space<vmem>>, %arg5: memref<2x8x32xf32, #tpu.memory_space<vmem>>, %arg6: memref<2x8x8xf32, #tpu.memory_space<vmem>>, %arg7: memref<2x8x8xf32, #tpu.memory_space<vmem>>) attributes {dimension_semantics = [#tpu.dimension_semantics<parallel>, #tpu.dimension_semantics<parallel>], iteration_bounds = array<i64: 1, 1>, scalar_prefetch = 0 : i64, scratch_operands = 0 : i64, tpu.core_type = #tpu.core_type<tc>, window_params = [{transform_indices = @transform_0, window_bounds = array<i64: 2, 8, 32>}, {transform_indices = @transform_1, window_bounds = array<i64: 2, 8, 32>}, {transform_indices = @transform_2, window_bounds = array<i64: 2, 8, 32>}, {transform_indices = @transform_3, window_bounds = array<i64: 2, 8, 32>}, {transform_indices = @transform_4, window_bounds = array<i64: 2, 8, 8>}, {transform_indices = @transform_5, window_bounds = array<i64: 2, 8, 8>}]} {
    %c0 = arith.constant 0 : index
    %c0_0 = arith.constant 0 : index
    %c0_1 = arith.constant 0 : index
    %0 = vector.load %arg2[%c0, %c0_0, %c0_1] : memref<2x8x32xf32, #tpu.memory_space<vmem>>, vector<2x8x32xf32>
    %cst = arith.constant 0.176776692 : f32
    %1 = vector.broadcast %cst : f32 to vector<2x8x32xf32>
    %2 = arith.mulf %0, %1 : vector<2x8x32xf32>
    %c0_2 = arith.constant 0 : index
    %c0_3 = arith.constant 0 : index
    %c0_4 = arith.constant 0 : index
    %3 = vector.load %arg3[%c0_2, %c0_3, %c0_4] : memref<2x8x32xf32, #tpu.memory_space<vmem>>, vector<2x8x32xf32>
    %cst_5 = arith.constant dense<0.000000e+00> : vector<2x8x8xf32>
    %4 = tpu.matmul %2, %3, %cst_5 {dimension_numbers = #tpu.dot_dimension_numbers<[2], [2], [1], [1], [0, 0, 0, 1, 1, 1], [0], [0]>} : vector<2x8x32xf32>, vector<2x8x32xf32>, vector<2x8x8xf32> -> vector<2x8x8xf32>
    %cst_6 = arith.constant dense<0xFF800000> : vector<2x8xf32>
    %5 = vector.multi_reduction <maximumf>, %4, %cst_6 [2] : vector<2x8x8xf32> to vector<2x8xf32>
    %6 = vector.shape_cast %5 : vector<2x8xf32> to vector<2x8x1xf32>
    %7 = vector.broadcast %6 : vector<2x8x1xf32> to vector<2x8x8xf32>
    %8 = arith.subf %4, %7 : vector<2x8x8xf32>
    %9 = math.exp %8 : vector<2x8x8xf32>
    %cst_7 = arith.constant dense<0.000000e+00> : vector<2x8xf32>
    %10 = vector.multi_reduction <add>, %9, %cst_7 [2] : vector<2x8x8xf32> to vector<2x8xf32>
    %11 = vector.shape_cast %10 : vector<2x8xf32> to vector<2x8x1xf32>
    %12 = math.log %11 : vector<2x8x1xf32>
    %13 = vector.broadcast %12 : vector<2x8x1xf32> to vector<2x8x8xf32>
    %14 = arith.subf %8, %13 : vector<2x8x8xf32>
    %c0_8 = arith.constant 0 : index
    %c0_9 = arith.constant 0 : index
    %c0_10 = arith.constant 0 : index
    %15 = vector.load %arg7[%c0_8, %c0_9, %c0_10] : memref<2x8x8xf32, #tpu.memory_space<vmem>>, vector<2x8x8xf32>
    tpu.vector_store %arg7[%c0_8, %c0_9, %c0_10], %14 {strides = array<i32>} : memref<2x8x8xf32, #tpu.memory_space<vmem>>, vector<2x8x8xf32>,
    %16 = tpu.reciprocal %11 : vector<2x8x1xf32> -> vector<2x8x1xf32>
    %17 = vector.broadcast %16 : vector<2x8x1xf32> to vector<2x8x8xf32>
    %18 = arith.mulf %9, %17 : vector<2x8x8xf32>
    %c0_11 = arith.constant 0 : index
    %c0_12 = arith.constant 0 : index
    %c0_13 = arith.constant 0 : index
    %19 = vector.load %arg6[%c0_11, %c0_12, %c0_13] : memref<2x8x8xf32, #tpu.memory_space<vmem>>, vector<2x8x8xf32>
    tpu.vector_store %arg6[%c0_11, %c0_12, %c0_13], %18 {strides = array<i32>} : memref<2x8x8xf32, #tpu.memory_space<vmem>>, vector<2x8x8xf32>,
    %c0_14 = arith.constant 0 : index
    %c0_15 = arith.constant 0 : index
    %c0_16 = arith.constant 0 : index
    %20 = vector.load %arg6[%c0_14, %c0_15, %c0_16] : memref<2x8x8xf32, #tpu.memory_space<vmem>>, vector<2x8x8xf32>
    %c0_17 = arith.constant 0 : index
    %c0_18 = arith.constant 0 : index
    %c0_19 = arith.constant 0 : index
    %21 = vector.load %arg4[%c0_17, %c0_18, %c0_19] : memref<2x8x32xf32, #tpu.memory_space<vmem>>, vector<2x8x32xf32>
    %cst_20 = arith.constant dense<0.000000e+00> : vector<2x8x32xf32>
    %22 = tpu.matmul %20, %21, %cst_20 {dimension_numbers = #tpu.dot_dimension_numbers<[2], [1], [1], [2], [0, 0, 0, 1, 1, 2], [0], [0]>} : vector<2x8x8xf32>, vector<2x8x32xf32>, vector<2x8x32xf32> -> vector<2x8x32xf32>
    %c0_21 = arith.constant 0 : index
    %c0_22 = arith.constant 0 : index
    %c0_23 = arith.constant 0 : index
    %23 = vector.load %arg5[%c0_21, %c0_22, %c0_23] : memref<2x8x32xf32, #tpu.memory_space<vmem>>, vector<2x8x32xf32>
    tpu.vector_store %arg5[%c0_21, %c0_22, %c0_23], %22 {strides = array<i32>} : memref<2x8x32xf32, #tpu.memory_space<vmem>>, vector<2x8x32xf32>,
    return
  }
  func.func @transform_0(%arg0: i32, %arg1: i32) -> (i32, i32, i32) {
    %c0_i32 = arith.constant 0 : i32
    %c0_i32_0 = arith.constant 0 : i32
    return %arg0, %arg1, %c0_i32 : i32, i32, i32
  }
  func.func @transform_1(%arg0: i32, %arg1: i32) -> (i32, i32, i32) {
    %c0_i32 = arith.constant 0 : i32
    %c0_i32_0 = arith.constant 0 : i32
    %c0_i32_1 = arith.constant 0 : i32
    return %arg0, %c0_i32, %c0_i32_0 : i32, i32, i32
  }
  func.func @transform_2(%arg0: i32, %arg1: i32) -> (i32, i32, i32) {
    %c0_i32 = arith.constant 0 : i32
    %c0_i32_0 = arith.constant 0 : i32
    %c0_i32_1 = arith.constant 0 : i32
    return %arg0, %c0_i32, %c0_i32_0 : i32, i32, i32
  }
  func.func @transform_3(%arg0: i32, %arg1: i32) -> (i32, i32, i32) {
    %c0_i32 = arith.constant 0 : i32
    %c0_i32_0 = arith.constant 0 : i32
    return %arg0, %arg1, %c0_i32 : i32, i32, i32
  }
  func.func @transform_4(%arg0: i32, %arg1: i32) -> (i32, i32, i32) {
    %c0_i32 = arith.constant 0 : i32
    %c0_i32_0 = arith.constant 0 : i32
    return %arg0, %arg1, %c0_i32 : i32, i32, i32
  }
  func.func @transform_5(%arg0: i32, %arg1: i32) -> (i32, i32, i32) {
    %c0_i32 = arith.constant 0 : i32
    %c0_i32_0 = arith.constant 0 : i32
    return %arg0, %arg1, %c0_i32 : i32, i32, i32
  }
}

</mosaic_0001>

<bundles_post_ra>
// kernel: tpu_custom_call.1
= control target key start
LH: loop header
LB: loop body
LE: loop exit
PB: predicated region body
PF: predicated region fallthrough
CT: control target
= control target key end

     0   :  { %11 = vsyncpa [#allocation3], 0  ;;  %s559_s0 = inlined_call_operand.hbm [shape: f32[2,8,32], index: 0, kind: input, shape index: {}]   ;;  %s560_s1 = inlined_call_operand.hbm [shape: f32[2,8,32], index: 1, kind: input, shape index: {}]   ;;  %s561_s2 = inlined_call_operand.hbm [shape: f32[2,8,32], index: 2, kind: input, shape index: {}]   ;;  %s562_s3 = inlined_call_operand.hbm [shape: f32[2,8,32], index: 3, kind: output, shape index: {0}]   ;;  %s563_s4 = inlined_call_operand.hbm [shape: f32[2,8,8], index: 4, kind: output, shape index: {1}]   ;;  %s564_s5 = inlined_call_operand.hbm [shape: f32[2,8,8], index: 5, kind: output, shape index: {2}]  }
   0x1   :  { %12 = vsyncpa [#allocation6], 0 }
   0x2   :  { %13 = vsyncpa [#allocation4], 0 }
   0x3   :  { %14 = vsyncpa [#allocation10], 0  ;;  %s32_s20 = sshll.u32 %s560_s1, 4  ;;  %s469_s21 = smov [#allocation5]   ;;  %s33_s20 = int_to_ptr.hbm [resolvable:$true] %s32_s20 }
   0x4   :  { %s34_s22 = sshll.u32 %s469_s21, 4  ;;  %s19_s25 = sshll.u32 %s559_s0, 4  ;;  %s35_s22 = int_to_ptr.vmem [resolvable:$true] %s34_s22  ;;  %s20_s25 = int_to_ptr.hbm [resolvable:$true] %s19_s25 }
   0x5   :  { %s470_s26 = smov 128   ;;  %s471_s27 = smov 8  }
   0x6   :  { %40 = dma.hbm_to_vmem [thread:$0]  %s33_s20, 256, %s35_s22, [#allocation6], %s470_s26, %s470_s26, %s471_s27  }
   0x7   :  { %s472_s28 = smov [#allocation2]   ;;  %s45_s1 = sshll.u32 %s561_s2, 4  ;;  %s46_s1 = int_to_ptr.hbm [resolvable:$true] %s45_s1 }
   0x8   :  { %s21_s29 = sshll.u32 %s472_s28, 4  ;;  %s473_s0 = smov [#allocation7]   ;;  %s22_s29 = int_to_ptr.vmem [resolvable:$true] %s21_s29 }
   0x9   :  { %27 = dma.hbm_to_vmem [thread:$0]  %s20_s25, 256, %s22_s29, [#allocation3], %s470_s26, %s470_s26, %s471_s27  }
   0xa   :  { %s47_s7 = sshll.u32 %s473_s0, 4  ;;  %s48_s7 = int_to_ptr.vmem [resolvable:$true] %s47_s7 }
   0xb   :  { %53 = dma.hbm_to_vmem [thread:$0]  %s46_s1, 256, %s48_s7, [#allocation6], %s470_s26, %s470_s26, %s471_s27  }
   0xc   :  { %461 = dma.done.wait [#allocation3], 256  }
   0xd   :  { %462 = vsyncadd [#allocation3], 4294967040 }
   0xe   :  { %463 = dma.done.wait [#allocation6], 512  }
   0xf   :  { %464 = vsyncadd [#allocation6], 4294966784  ;;  %vm72_vm0 = vcmask 261120   ;;  %v70_v0 = vld [vmem:[#allocation5] sm:$0xff]  ;;  %v66_v1 = vld [vmem:[#allocation2] sm:$0xff]  ;;  %vm125_vm1 = vcmask 64512  }
  0x10   :  { %v71_v2 = vld [vmem:[#allocation5 + $0x8] sm:$0xff]  ;;  %291 = vmatpush.xpose.msk.msra.mxu0 %vm72_vm0, %v70_v0  ;;  %v68_v3 = vmul.f32 0.17677669, %v66_v1  ;;  %v67_v4 = vld [vmem:[#allocation2 + $0x8] sm:$0xff]  ;;  %v186_v20 = vld [vmem:[#allocation7] sm:$0xff]  ;;  %s474_s2 = smov [#allocation9]  }
  0x11   :  { %293 = vmatpush.xpose.msk.msra.mxu1 %vm72_vm0, %v71_v2  ;;  %v69_v5 = vmul.f32 0.17677669, %v67_v4  ;;  %206 = vmatpush.msra.mxu2 %v186_v20  ;;  %v187_v21 = vld [vmem:[#allocation7 + $0x8] sm:$0xff]  ;;  %s253_s8 = sshll.u32 %s474_s2, 4  ;;  %s255_s11 = sshll.u32 %s563_s4, 4  ;;  %s254_s8 = int_to_ptr.vmem [resolvable:$true] %s253_s8  ;;  %s256_s11 = int_to_ptr.hbm [resolvable:$true] %s255_s11 }
  0x12   :  { %229 = vmatpush.msra.mxu3 %v187_v21  ;;  %s475_s12 = smov [#allocation11]   ;;  %s268_s16 = sshll.u32 %s564_s5, 4  ;;  %s269_s16 = int_to_ptr.hbm [resolvable:$true] %s268_s16 }
  0x13   :  { %292 = vmatmul.msk.f32.vlgmr.msra.gmra.mxu0 %vm72_vm0, %v68_v3  ;;  %s266_s13 = sshll.u32 %s475_s12, 4  ;;  %s476_s4 = smov [#allocation8]   ;;  %s267_s13 = int_to_ptr.vmem [resolvable:$true] %s266_s13 }
  0x14   :  { %294 = vmatmul.msk.f32.vlgmr.msra.gmra.mxu1 %vm72_vm0, %v69_v5  ;;  %s240_s17 = sshll.u32 %s476_s4, 4  ;;  %s242_s20 = sshll.u32 %s562_s3, 4  ;;  %s241_s17 = int_to_ptr.vmem [resolvable:$true] %s240_s17  ;;  %s243_s20 = int_to_ptr.hbm [resolvable:$true] %s242_s20 }
  0x90   :  { %v96_v6 = vpop.f32.mrf.mxu0 }
  0x91   :  { %v126_v7 = vsel %vm125_vm1, %v96_v6, -inf  ;;  %v122_v8 = vpop.f32.mrf.mxu1 }
  0x92   :  { %127 = vmax.xlane.f32.xlu0 %v126_v7  ;;  %v129_v9 = vsel %vm125_vm1, %v122_v8, -inf }
  0x9a   :  { %130 = vmax.xlane.f32.xlu0 %v129_v9 }
 0x105   :  { %v128_v10 = vpop.xlane.xlu0 %127 }
 0x106   :  { %v132_v11 = vsub.f32 %v96_v6, %v128_v10 }
 0x108   :  { %v134_v12 = vmul.f32 1.442695, %v132_v11 }
 0x10a   :  { %305 = vpow2.f32 %v134_v12 }
 0x10d   :  { %v131_v13 = vpop.xlane.xlu0 %130 }
 0x10e   :  { %v133_v14 = vsub.f32 %v122_v8, %v131_v13 }
 0x110   :  { %v306_v15 = vpop.eup %305  ;;  %v136_v16 = vmul.f32 1.442695, %v133_v14 }
 0x111   :  { %v138_v17 = vsel %vm125_vm1, %v306_v15, 0.0 }
 0x112   :  { %307 = vpow2.f32 %v136_v16  ;;  %139 = vadd.xlane.f32.xlu1 %v138_v17 }
 0x118   :  { %v308_v18 = vpop.eup %307 }
 0x119   :  { %v141_v19 = vsel %vm125_vm1, %v308_v18, 0.0 }
 0x11a   :  { %142 = vadd.xlane.f32.xlu1 %v141_v19 }
 0x185   :  { %v140_v22 = vpop.xlane.xlu1 %139 }
 0x186   :  { %309 = vlog2.f32 %v140_v22  ;;  %v163_v30 = vand.u32 2147483648, %v140_v22  ;;  %v161_v32 = vand.u32 2147483647, %v140_v22  ;;  %vm157_vm3 = vweird.f32 %v140_v22 }
 0x187   :  { %311 = vrcp.f32 %v140_v22 }
 0x188   :  { %v164_v36 = vor.u32 1.1754944e-38, %v163_v30  ;;  %vm162_vm5 = vcmp.eq.f32.partialorder %v161_v32, 8.507059e+37 }
 0x18c   :  { %v310_v23 = vpop.eup %309 }
 0x18d   :  { %v312_v24 = vpop.eup %311  ;;  %v145_v25 = vmul.f32 0.6931472, %v310_v23  ;;  %v143_v26 = vpop.xlane.xlu1 %142 }
 0x18e   :  { %v153_v27 = vmul.f32 %v312_v24, %v140_v22  ;;  %313 = vlog2.f32 %v143_v26  ;;  %vm158_vm2 = vweird.f32 %v312_v24  ;;  %v177_v44 = vand.u32 2147483648, %v143_v26 }
 0x18f   :  { %315 = vrcp.f32 %v143_v26  ;;  %v148_v28 = vsub.f32 %v132_v11, %v145_v25  ;;  %vm159_vm4 = vmor %vm157_vm3, %vm158_vm2  ;;  %v175_v46 = vand.u32 2147483647, %v143_v26  ;;  %vm171_vm7 = vweird.f32 %v143_v26 }
 0x190   :  { %v154_v29 = vsub.f32 1.0, %v153_v27  ;;  %v178_v48 = vor.u32 1.1754944e-38, %v177_v44 }
 0x191   :  { %150 = vst.msk [vmem:[#allocation11] sm:$0xff] %vm125_vm1, %v148_v28  ;;  %vm176_vm9 = vcmp.eq.f32.partialorder %v175_v46, 8.507059e+37 }
 0x192   :  { %v155_v31 = vmul.f32 %v312_v24, %v154_v29 }
 0x194   :  { %v314_v33 = vpop.eup %313  ;;  %v156_v34 = vadd.f32 %v312_v24, %v155_v31 }
 0x195   :  { %v316_v35 = vpop.eup %315  ;;  %v147_v37 = vmul.f32 0.6931472, %v314_v33 }
 0x196   :  { %v160_v38 = vsel %vm159_vm4, %v312_v24, %v156_v34  ;;  %v167_v39 = vmul.f32 %v316_v35, %v143_v26  ;;  %vm172_vm6 = vweird.f32 %v316_v35 }
 0x197   :  { %v165_v40 = vsel %vm162_vm5, %v164_v36, %v160_v38  ;;  %v149_v41 = vsub.f32 %v133_v14, %v147_v37  ;;  %vm173_vm8 = vmor %vm171_vm7, %vm172_vm6 }
 0x198   :  { %v180_v42 = vmul.f32 %v306_v15, %v165_v40  ;;  %v168_v43 = vsub.f32 1.0, %v167_v39 }
 0x199   :  { %151 = vst.msk [vmem:[#allocation11 + $0x8] sm:$0xff] %vm125_vm1, %v149_v41 }
 0x19a   :  { %182 = vst.msk [vmem:[#allocation9] sm:$0xff] %vm125_vm1, %v180_v42  ;;  %v169_v45 = vmul.f32 %v316_v35, %v168_v43 }
 0x19c   :  { %v170_v47 = vadd.f32 %v316_v35, %v169_v45 }
 0x19e   :  { %v174_v49 = vsel %vm173_vm8, %v316_v35, %v170_v47 }
 0x19f   :  { %v179_v50 = vsel %vm176_vm9, %v178_v48, %v174_v49 }
 0x1a0   :  { %v181_v51 = vmul.f32 %v308_v18, %v179_v50 }
 0x1a1   :  { %v184_v52 = vld [vmem:[#allocation9] sm:$0xff] }
 0x1a2   :  { %183 = vst.msk [vmem:[#allocation9 + $0x8] sm:$0xff] %vm125_vm1, %v181_v51  ;;  %295 = vmatmul.msk.f32.vlgmr.msra.gmra.mxu2 %vm125_vm1, %v184_v52 }
 0x1a3   :  { %261 = dma.vmem_to_hbm [thread:$0]  %s254_s8, 256, %s256_s11, [#allocation10], %s470_s26, %s470_s26, %s471_s27  }
 0x1a4   :  { %274 = dma.vmem_to_hbm [thread:$0]  %s267_s13, 256, %s269_s16, [#allocation10], %s470_s26, %s470_s26, %s471_s27  }
 0x1a9   :  { %v185_v53 = vld [vmem:[#allocation9 + $0x8] sm:$0xff] }
 0x1aa   :  { %296 = vmatmul.msk.f32.vlgmr.msra.gmra.mxu3 %vm125_vm1, %v185_v53 }
 0x225   :  { %v208_v54 = vpop.f32.mrf.mxu2 }
 0x226   :  { %234 = vst.msk [vmem:[#allocation8] sm:$0xff] %vm72_vm0, %v208_v54 }
 0x22d   :  { %v231_v55 = vpop.f32.mrf.mxu3 }
 0x22e   :  { %235 = vst.msk [vmem:[#allocation8 + $0x8] sm:$0xff] %vm72_vm0, %v231_v55 }
 0x22f   :  { %248 = dma.vmem_to_hbm [thread:$0]  %s241_s17, 256, %s243_s20, [#allocation4], %s470_s26, %s470_s26, %s471_s27  }
 0x230   :  { %465 = dma.done.wait [#allocation4], 256  }
 0x231   :  { %466 = vsyncadd [#allocation4], 4294967040 }
 0x232   :  { %467 = dma.done.wait [#allocation10], 512  }
 0x233   :  { %468 = vsyncadd [#allocation10], 4294966784 }
 0x234   :  { %287 = vsyncpa [#allocation3], 1 }
 0x235   :  { %288 = vsyncpa [#allocation6], 1 }
 0x236   :  { %289 = vsyncpa [#allocation4], 1 }
 0x237   :  { %290 = vsyncpa [#allocation10], 1 }

</bundles_post_ra>
